<compile_context>
chip_gen: v7x
topology: tpu7x:2x2x1
jax: 0.10.0
libtpu: 0.0.40
codegen_flags: <defaults>
</compile_context>

<pallas_src>
import math

import jax
import jax.numpy as jnp
from jax.experimental import pallas as pl
from jax.experimental.pallas import tpu as pltpu

_GELU_C = math.sqrt(22.0 / 7.0)  # faithful to the source module


def _round_up(n, m):
    return ((n + m - 1) // m) * m


def _gelu_bert(h):
    # 0.5*h*(1 + tanh(c*(h + 0.044715*h^3))), pow-free; tanh goes to the EUP slot.
    inner = _GELU_C * h * (1.0 + 0.044715 * (h * h))
    return 0.5 * h * (1.0 + jnp.tanh(inner))


def _chip_config():
    """Per-generation tiling / VMEM-budget knobs (robust to unknown chips)."""
    kind = ""
    try:
        kind = jax.devices()[0].device_kind.lower()
    except Exception:
        pass
    if "v7" in kind:
        cfg = dict(phys_vmem=64 << 20, tm_target=512, two_cores=True, bf16_vpu=True)
    elif "v6" in kind:
        cfg = dict(phys_vmem=128 << 20, tm_target=768, two_cores=False, bf16_vpu=True)
    elif "v5" in kind and ("lite" in kind or "5e" in kind):
        cfg = dict(phys_vmem=128 << 20, tm_target=512, two_cores=False, bf16_vpu=False)
    else:  # unknown / older generation: be conservative
        cfg = dict(phys_vmem=64 << 20, tm_target=512, two_cores=False, bf16_vpu=False)
    try:  # refine with the real VMEM capacity when the query is available
        cfg["phys_vmem"] = int(pltpu.get_tpu_info().vmem_capacity_bytes)
    except Exception:
        pass
    cfg["budget"] = int(cfg["phys_vmem"] * 0.82)  # headroom for compiler-internal scratch
    return cfg


def _make_resident_kernel(gelu_dtype):
    """Whole W1/W2 resident in VMEM (constant block index); 1-D grid over row tiles."""
    def kernel(x_ref, w1_ref, b1_ref, w2_ref, b2_ref, o_ref):
        h = jnp.dot(x_ref[...].astype(w1_ref.dtype), w1_ref[...],
                    preferred_element_type=jnp.float32)
        h = h + b1_ref[...].astype(jnp.float32)
        g = _gelu_bert(h.astype(gelu_dtype))
        # dropout: identity at inference.
        out = jnp.dot(g.astype(w2_ref.dtype), w2_ref[...],
                      preferred_element_type=jnp.float32)
        o_ref[...] = (out + b2_ref[...].astype(jnp.float32)).astype(o_ref.dtype)
    return kernel


def _make_streamed_kernel(gelu_dtype):
    """W1 column / W2 row tiles streamed over a d_ff grid axis; f32 accumulator."""
    def kernel(x_ref, w1_ref, b1_ref, w2_ref, b2_ref, o_ref, acc_ref):
        k = pl.program_id(1)
        nk = pl.num_programs(1)

        @pl.when(k == 0)
        def _():
            acc_ref[...] = jnp.zeros_like(acc_ref)

        h = jnp.dot(x_ref[...].astype(w1_ref.dtype), w1_ref[...],
                    preferred_element_type=jnp.float32)
        h = h + b1_ref[...].astype(jnp.float32)
        g = _gelu_bert(h.astype(gelu_dtype))
        # dropout: identity at inference.
        part = jnp.dot(g.astype(w2_ref.dtype), w2_ref[...],
                       preferred_element_type=jnp.float32)

        @pl.when(k < nk - 1)
        def _():
            acc_ref[...] += part

        @pl.when(k == nk - 1)
        def _():  # fused final step: skip one accumulator store+load per row tile
            o_ref[...] = (acc_ref[...] + part
                          + b2_ref[...].astype(jnp.float32)).astype(o_ref.dtype)
    return kernel


def feed_forward(x, w1, b1, w2, b2, *, tm=None, tf=None):
    """x: (..., d_model); w1: (d_model, d_ff); b1: (d_ff,); w2: (d_ff, d_model); b2: (d_model,).

    tm/tf are optional overrides; by default they are chosen per TPU generation
    (weights VMEM-resident if they fit, otherwise streamed with a chip-sized tm).
    """
    d_model = x.shape[-1]
    d_ff = w1.shape[-1]
    lead = x.shape[:-1]
    rows = int(math.prod(lead)) if lead else 1
    x2 = x.reshape(rows, d_model)

    cfg = _chip_config()
    budget = cfg["budget"]

    xb = jnp.dtype(x2.dtype).itemsize
    w1b = jnp.dtype(w1.dtype).itemsize
    w2b = jnp.dtype(w2.dtype).itemsize
    b1b = jnp.dtype(b1.dtype).itemsize
    b2b = jnp.dtype(b2.dtype).itemsize
    ob = xb  # output dtype == input dtype

    # --- row tiling: dtype-aware sublane multiple, balanced tiles, megacore guard ---
    row_mult = {4: 8, 2: 16, 1: 32}.get(xb, 8)
    if tm is None:
        tm = cfg["tm_target"]  # >= per-chip flops/byte threshold for the streamed regime
    tm = max(row_mult, min(int(tm), _round_up(rows, row_mult)))
    tm = _round_up(tm, row_mult)
    n_row_tiles = -(-rows // tm)
    if cfg["two_cores"] and n_row_tiles == 1 and rows >= 256:
        n_row_tiles = 2  # keep both v7x TensorCores busy on the "parallel" axis
    tm = _round_up(-(-rows // n_row_tiles), row_mult)  # balance tiles (less pad waste)
    rows_p = n_row_tiles * tm
    if rows_p != rows:
        x2 = jnp.pad(x2, ((0, rows_p - rows), (0, 0)))

    # --- d_ff handling: weights VMEM-resident if they fit, else streamed tiles ---
    def vmem_bytes(tf_, with_acc):
        b = (2 * tm * d_model * xb + 2 * tm * d_model * ob        # x / out tiles (double-buffered)
             + 2 * d_model * tf_ * w1b + 2 * tf_ * d_model * w2b  # weight tiles
             + 2 * tf_ * b1b + 2 * d_model * b2b)                 # biases
        if with_acc:
            b += tm * d_model * 4
        return b

    if tf is None:
        if vmem_bytes(d_ff, with_acc=False) <= budget:
            tf = d_ff  # resident: weights fetched from HBM exactly once for the whole call
        else:
            tf = 128
            for cand in (8192, 4096, 2048, 1024, 512, 256, 128):
                if cand < d_ff and vmem_bytes(cand, with_acc=True) <= budget:
                    tf = cand
                    break
    tf = int(tf)
    resident = tf >= d_ff
    if not resident:
        tf = max(128, (tf // 128) * 128)
        resident = tf >= d_ff

    # GELU in bf16 only where the VPU/EUP have a native bf16 path (v6e/v7x).
    gelu_dtype = (jnp.bfloat16
                  if cfg["bf16_vpu"] and jnp.dtype(w1.dtype) == jnp.bfloat16
                  else jnp.float32)

    if resident:
        d_ff_p = d_ff
    else:
        d_ff_p = _round_up(d_ff, tf)
        if d_ff_p != d_ff:  # exact: gelu(0) = 0, padded hidden columns contribute nothing
            pad = d_ff_p - d_ff
            w1 = jnp.pad(w1, ((0, 0), (0, pad)))
            b1 = jnp.pad(b1, ((0, pad),))
            w2 = jnp.pad(w2, ((0, pad), (0, 0)))

    b1_2d = b1.reshape(1, d_ff_p)
    b2_2d = b2.reshape(1, d_model)

    weight_passes = 1 if resident else n_row_tiles  # streamed weights are re-read per row tile
    cost = pl.CostEstimate(
        flops=4 * rows_p * d_model * d_ff_p,          # two matmuls
        transcendentals=rows_p * d_ff_p,              # tanh per hidden element
        bytes_accessed=int(x2.size * xb + rows_p * d_model * ob
                           + weight_passes * (w1.size * w1b + w2.size * w2b)
                           + b1_2d.size * b1b + b2_2d.size * b2b),
    )
    compiler_params = pltpu.CompilerParams(
        dimension_semantics=("parallel",) if resident else ("parallel", "arbitrary"),
        vmem_limit_bytes=int(budget),
    )

    if resident:
        out = pl.pallas_call(
            _make_resident_kernel(gelu_dtype),
            out_shape=jax.ShapeDtypeStruct((rows_p, d_model), x.dtype),
            grid_spec=pltpu.PrefetchScalarGridSpec(
                num_scalar_prefetch=0,
                grid=(n_row_tiles,),
                in_specs=[
                    pl.BlockSpec((tm, d_model), lambda i: (i, 0)),      # x row tile
                    pl.BlockSpec((d_model, d_ff_p), lambda i: (0, 0)),  # W1 (resident)
                    pl.BlockSpec((1, d_ff_p), lambda i: (0, 0)),        # b1
                    pl.BlockSpec((d_ff_p, d_model), lambda i: (0, 0)),  # W2 (resident)
                    pl.BlockSpec((1, d_model), lambda i: (0, 0)),       # b2
                ],
                out_specs=pl.BlockSpec((tm, d_model), lambda i: (i, 0)),
            ),
            compiler_params=compiler_params,
            cost_estimate=cost,
        )(x2, w1, b1_2d, w2, b2_2d)
    else:
        # TODO(synk): also tile d_model for very large models on v7x (64 MiB VMEM), and
        # consider pipeline_mode=pl.Buffered(3) on the weight specs if DMA is exposed on v5e.
        out = pl.pallas_call(
            _make_streamed_kernel(gelu_dtype),
            out_shape=jax.ShapeDtypeStruct((rows_p, d_model), x.dtype),
            grid_spec=pltpu.PrefetchScalarGridSpec(
                num_scalar_prefetch=0,
                grid=(n_row_tiles, d_ff_p // tf),
                in_specs=[
                    pl.BlockSpec((tm, d_model), lambda i, k: (i, 0)),   # x row tile
                    pl.BlockSpec((d_model, tf), lambda i, k: (0, k)),   # W1 column tile
                    pl.BlockSpec((1, tf), lambda i, k: (0, k)),         # b1 chunk
                    pl.BlockSpec((tf, d_model), lambda i, k: (k, 0)),   # W2 row tile
                    pl.BlockSpec((1, d_model), lambda i, k: (0, 0)),    # b2
                ],
                out_specs=pl.BlockSpec((tm, d_model), lambda i, k: (i, 0)),
                scratch_shapes=[pltpu.VMEM((tm, d_model), jnp.float32)],
            ),
            compiler_params=compiler_params,
            cost_estimate=cost,
        )(x2, w1, b1_2d, w2, b2_2d)

    return out[:rows].reshape(*lead, d_model)


if __name__ == "__main__":
    key = jax.random.PRNGKey(0)

    def init_params(k, d_model, d_ff, dtype=jnp.float32):
        kw1, kb1, kw2, kb2 = jax.random.split(k, 4)
        bound1 = 1.0 / math.sqrt(d_model)
        bound2 = 1.0 / math.sqrt(d_ff)
        w1 = jax.random.uniform(kw1, (d_model, d_ff), minval=-bound1, maxval=bound1, dtype=dtype)
        b1 = jax.random.uniform(kb1, (d_ff,), minval=-bound1, maxval=bound1, dtype=dtype)
        w2 = jax.random.uniform(kw2, (d_ff, d_model), minval=-bound2, maxval=bound2, dtype=dtype)
        b2 = jax.random.uniform(kb2, (d_model,), minval=-bound2, maxval=bound2, dtype=dtype)
        return w1, b1, w2, b2

    def ref_ffn(x, w1, b1, w2, b2):
        xf = x.astype(jnp.float32)
        h = xf @ w1.astype(jnp.float32) + b1.astype(jnp.float32)
        g = 0.5 * h * (1.0 + jnp.tanh(math.sqrt(22.0 / 7.0) * (h + 0.044715 * h ** 3)))
        return g @ w2.astype(jnp.float32) + b2.astype(jnp.float32)

    # --- test 1: small module-consistent shapes (resident-weights path) ---
    batch, seq, d_model, d_ff = 2, 8, 32, 64
    kx, kp, key = jax.random.split(key, 3)
    x = jax.random.normal(kx, (batch, seq, d_model), dtype=jnp.float32)
    w1, b1, w2, b2 = init_params(kp, d_model, d_ff)
    out = jax.block_until_ready(feed_forward(x, w1, b1, w2, b2))
    ref = ref_ffn(x.reshape(-1, d_model), w1, b1, w2, b2).reshape(batch, seq, d_model)
    assert out.shape == (batch, seq, d_model)
    assert jnp.allclose(out, ref, atol=1e-5, rtol=1e-5)

    # --- test 2: exercises row padding + the streamed/accumulated d_ff path ---
    batch, seq, d_model, d_ff = 3, 50, 128, 640   # rows=150 -> padded; d_ff split into tiles
    kx, kp, key = jax.random.split(key, 3)
    x = jax.random.normal(kx, (batch, seq, d_model), dtype=jnp.float32)
    w1, b1, w2, b2 = init_params(kp, d_model, d_ff)
    out = jax.block_until_ready(feed_forward(x, w1, b1, w2, b2, tm=64, tf=128))
    ref = ref_ffn(x.reshape(-1, d_model), w1, b1, w2, b2).reshape(batch, seq, d_model)
    assert out.shape == (batch, seq, d_model)
    assert jnp.allclose(out, ref, atol=1e-4, rtol=1e-4)

    # --- test 3: bf16 weights/activations (exercises the bf16 MXU cast path) ---
    batch, seq, d_model, d_ff = 2, 16, 64, 256
    kx, kp, key = jax.random.split(key, 3)
    x = jax.random.normal(kx, (batch, seq, d_model), dtype=jnp.bfloat16)
    w1, b1, w2, b2 = init_params(kp, d_model, d_ff, dtype=jnp.bfloat16)
    out = jax.block_until_ready(feed_forward(x, w1, b1, w2, b2))
    ref = ref_ffn(x.reshape(-1, d_model), w1, b1, w2, b2).reshape(batch, seq, d_model)
    assert out.shape == (batch, seq, d_model)
    assert jnp.allclose(out.astype(jnp.float32), ref, atol=5e-2, rtol=5e-2)

    print("KERNEL_OK")
</pallas_src>

<mosaic_0001>
module attributes {stable_mosaic.version = 11 : i64} {
  func.func @kernel(%arg0: i32, %arg1: memref<16x32xf32, #tpu.memory_space<vmem>>, %arg2: memref<32x64xf32, #tpu.memory_space<vmem>>, %arg3: memref<1x64xf32, #tpu.memory_space<vmem>>, %arg4: memref<64x32xf32, #tpu.memory_space<vmem>>, %arg5: memref<1x32xf32, #tpu.memory_space<vmem>>, %arg6: memref<16x32xf32, #tpu.memory_space<vmem>>) attributes {dimension_semantics = [#tpu.dimension_semantics<parallel>], iteration_bounds = array<i64: 1>, scalar_prefetch = 0 : i64, scratch_operands = 0 : i64, tpu.core_type = #tpu.core_type<tc>, window_params = [{transform_indices = @transform_0, window_bounds = array<i64: 16, 32>}, {pipeline_mode = #tpu.pipeline_mode<synchronous>, transform_indices = @transform_1, window_bounds = array<i64: 32, 64>}, {pipeline_mode = #tpu.pipeline_mode<synchronous>, transform_indices = @transform_2, window_bounds = array<i64: 1, 64>}, {pipeline_mode = #tpu.pipeline_mode<synchronous>, transform_indices = @transform_3, window_bounds = array<i64: 64, 32>}, {pipeline_mode = #tpu.pipeline_mode<synchronous>, transform_indices = @transform_4, window_bounds = array<i64: 1, 32>}, {transform_indices = @transform_5, window_bounds = array<i64: 16, 32>}]} {
    %c0 = arith.constant 0 : index
    %c0_0 = arith.constant 0 : index
    %0 = vector.load %arg1[%c0, %c0_0] : memref<16x32xf32, #tpu.memory_space<vmem>>, vector<16x32xf32>
    %c0_1 = arith.constant 0 : index
    %c0_2 = arith.constant 0 : index
    %1 = vector.load %arg2[%c0_1, %c0_2] : memref<32x64xf32, #tpu.memory_space<vmem>>, vector<32x64xf32>
    %cst = arith.constant dense<0.000000e+00> : vector<16x64xf32>
    %2 = tpu.matmul %0, %1, %cst {dimension_numbers = #tpu.dot_dimension_numbers<[1], [0], [0], [1], [0, 0, 1, 1], [], []>} : vector<16x32xf32>, vector<32x64xf32>, vector<16x64xf32> -> vector<16x64xf32>
    %c0_3 = arith.constant 0 : index
    %c0_4 = arith.constant 0 : index
    %3 = vector.load %arg3[%c0_3, %c0_4] : memref<1x64xf32, #tpu.memory_space<vmem>>, vector<1x64xf32>
    %4 = vector.broadcast %3 : vector<1x64xf32> to vector<16x64xf32>
    %5 = arith.addf %2, %4 : vector<16x64xf32>
    %cst_5 = arith.constant 1.77281058 : f32
    %6 = vector.broadcast %cst_5 : f32 to vector<16x64xf32>
    %7 = arith.mulf %6, %5 : vector<16x64xf32>
    %8 = arith.mulf %5, %5 : vector<16x64xf32>
    %cst_6 = arith.constant 4.471500e-02 : f32
    %9 = vector.broadcast %cst_6 : f32 to vector<16x64xf32>
    %10 = arith.mulf %9, %8 : vector<16x64xf32>
    %cst_7 = arith.constant 1.000000e+00 : f32
    %11 = vector.broadcast %cst_7 : f32 to vector<16x64xf32>
    %12 = arith.addf %11, %10 : vector<16x64xf32>
    %13 = arith.mulf %7, %12 : vector<16x64xf32>
    %cst_8 = arith.constant 5.000000e-01 : f32
    %14 = vector.broadcast %cst_8 : f32 to vector<16x64xf32>
    %15 = arith.mulf %14, %5 : vector<16x64xf32>
    %16 = math.tanh %13 : vector<16x64xf32>
    %cst_9 = arith.constant 1.000000e+00 : f32
    %17 = vector.broadcast %cst_9 : f32 to vector<16x64xf32>
    %18 = arith.addf %17, %16 : vector<16x64xf32>
    %19 = arith.mulf %15, %18 : vector<16x64xf32>
    %c0_10 = arith.constant 0 : index
    %c0_11 = arith.constant 0 : index
    %20 = vector.load %arg4[%c0_10, %c0_11] : memref<64x32xf32, #tpu.memory_space<vmem>>, vector<64x32xf32>
    %cst_12 = arith.constant dense<0.000000e+00> : vector<16x32xf32>
    %21 = tpu.matmul %19, %20, %cst_12 {dimension_numbers = #tpu.dot_dimension_numbers<[1], [0], [0], [1], [0, 0, 1, 1], [], []>} : vector<16x64xf32>, vector<64x32xf32>, vector<16x32xf32> -> vector<16x32xf32>
    %c0_13 = arith.constant 0 : index
    %c0_14 = arith.constant 0 : index
    %22 = vector.load %arg5[%c0_13, %c0_14] : memref<1x32xf32, #tpu.memory_space<vmem>>, vector<1x32xf32>
    %23 = vector.broadcast %22 : vector<1x32xf32> to vector<16x32xf32>
    %24 = arith.addf %21, %23 : vector<16x32xf32>
    %c0_15 = arith.constant 0 : index
    %c0_16 = arith.constant 0 : index
    %25 = vector.load %arg6[%c0_15, %c0_16] : memref<16x32xf32, #tpu.memory_space<vmem>>, vector<16x32xf32>
    tpu.vector_store %arg6[%c0_15, %c0_16], %24 {strides = array<i32>} : memref<16x32xf32, #tpu.memory_space<vmem>>, vector<16x32xf32>,
    return
  }
  func.func @transform_0(%arg0: i32) -> (i32, i32) {
    %c0_i32 = arith.constant 0 : i32
    %c0_i32_0 = arith.constant 0 : i32
    return %arg0, %c0_i32 : i32, i32
  }
  func.func @transform_1(%arg0: i32) -> (i32, i32) {
    %c0_i32 = arith.constant 0 : i32
    %c0_i32_0 = arith.constant 0 : i32
    %c0_i32_1 = arith.constant 0 : i32
    return %c0_i32, %c0_i32_0 : i32, i32
  }
  func.func @transform_2(%arg0: i32) -> (i32, i32) {
    %c0_i32 = arith.constant 0 : i32
    %c0_i32_0 = arith.constant 0 : i32
    %c0_i32_1 = arith.constant 0 : i32
    return %c0_i32, %c0_i32_0 : i32, i32
  }
  func.func @transform_3(%arg0: i32) -> (i32, i32) {
    %c0_i32 = arith.constant 0 : i32
    %c0_i32_0 = arith.constant 0 : i32
    %c0_i32_1 = arith.constant 0 : i32
    return %c0_i32, %c0_i32_0 : i32, i32
  }
  func.func @transform_4(%arg0: i32) -> (i32, i32) {
    %c0_i32 = arith.constant 0 : i32
    %c0_i32_0 = arith.constant 0 : i32
    %c0_i32_1 = arith.constant 0 : i32
    return %c0_i32, %c0_i32_0 : i32, i32
  }
  func.func @transform_5(%arg0: i32) -> (i32, i32) {
    %c0_i32 = arith.constant 0 : i32
    %c0_i32_0 = arith.constant 0 : i32
    return %arg0, %c0_i32 : i32, i32
  }
}

</mosaic_0001>

<bundles_post_ra>
// kernel: tpu_custom_call.1
= control target key start
LH: loop header
LB: loop body
LE: loop exit
PB: predicated region body
PF: predicated region fallthrough
CT: control target
= control target key end

     0   :  { %vm34_vm0 = vcmask 261120   ;;  %s453_s0 = inlined_call_operand.vmem [shape: f32[16,32], index: 0, kind: input, shape index: {}]   ;;  %s454_s1 = inlined_call_operand.vmem [shape: f32[32,64], index: 1, kind: input, shape index: {}]   ;;  %s455_s2 = inlined_call_operand.vmem [shape: f32[1,64], index: 2, kind: input, shape index: {}]   ;;  %s456_s3 = inlined_call_operand.vmem [shape: f32[64,32], index: 3, kind: input, shape index: {}]   ;;  %s457_s4 = inlined_call_operand.vmem [shape: f32[1,32], index: 4, kind: input, shape index: {}]   ;;  %s458_s5 = inlined_call_operand.hbm [shape: f32[16,32], index: 5, kind: output, shape index: {}]  }
   0x1   :  { %v23_v0 = vld [vmem:[%s454_s1] sm:$0xff]  ;;  %v24_v1 = vld [vmem:[%s454_s1 + $0x8] sm:$0xff]  ;;  %v25_v2 = vld [vmem:[%s454_s1 + $0x10] sm:$0xff] }
   0x2   :  { %v301_v3 = vpack.c.bf16 %v24_v1, %v23_v0  ;;  %v26_v4 = vld [vmem:[%s454_s1 + $0x18] sm:$0xff]  ;;  %v21_v5 = vld [vmem:[%s453_s0] sm:$0xff] }
   0x3   :  { %v305_v6 = vpack.c.bf16 %v26_v4, %v25_v2  ;;  %279 = vmatprep.mubr.msk.f32.mxu0 %vm34_vm0, %v21_v5 }
   0x4   :  { %10 = vsyncpa [#allocation3], 0  ;;  %302 = vmatprep.subr.bf16.mxu0 %v301_v3  ;;  %v22_v7 = vld [vmem:[%s453_s0 + $0x8] sm:$0xff]  ;;  %v134_v8 = vld [vmem:[%s456_s3] sm:$0xff]  ;;  %vm149_vm1 = vcmask 523264   ;;  %s356_s21 = smov [#allocation2]  }
   0x5   :  { %304 = vmatpush3.bf16.msra.mxu0 %v301_v3  ;;  %v135_v9 = vld [vmem:[%s456_s3 + $0x8] sm:$0xff]  ;;  %v136_v11 = vld [vmem:[%s456_s3 + $0x10] sm:$0xff]  ;;  %v137_v12 = vld [vmem:[%s456_s3 + $0x18] sm:$0xff]  ;;  %s238_s22 = sshll.u32 %s356_s21, 4  ;;  %s239_s22 = int_to_ptr.vmem [resolvable:$true] %s238_s22 }
   0x6   :  { %306 = vmatprep.subr.bf16.mxu0 %v305_v6  ;;  %v309_v10 = vpack.c.bf16 %v135_v9, %v134_v8  ;;  %v313_v13 = vpack.c.bf16 %v137_v12, %v136_v11  ;;  %v138_v14 = vld [vmem:[%s456_s3 + $0x20] sm:$0xff]  ;;  %v139_v15 = vld [vmem:[%s456_s3 + $0x28] sm:$0xff]  ;;  %v140_v17 = vld [vmem:[%s456_s3 + $0x30] sm:$0xff]  ;;  %s332_s23 = scalar_lea.vmem %s239_s22, 256  ;;  %p337_p1 = scmp.lt.s32.totalorder %s239_s22, %s239_s22 }
   0x7   :  { %v317_v16 = vpack.c.bf16 %v139_v15, %v138_v14  ;;  %v141_v18 = vld [vmem:[%s456_s3 + $0x38] sm:$0xff]  ;;  %v249_v20 = vld [vmem:[%s455_s2] ss:$0 sm:$0xff]  ;;  %p333_p0 = scmp.ne.s32.totalorder %s239_s22, %s332_s23  ;;  %p338_p2 = scmp.lt.s32.totalorder %s332_s23, %s332_s23 }
   0x8   :  { %310 = vmatprep.subr.bf16.mxu1 %v309_v10  ;;  %v321_v19 = vpack.c.bf16 %v141_v18, %v140_v17  ;;  %v252_v43 = vld [vmem:[%s457_s4] ss:$0 sm:$0xff] }
   0x9   :  { %308 = vmatpush3.bf16.msra.mxu0 %v305_v6  ;;  %312 = vmatpush3.bf16.msra.mxu1 %v309_v10  ;;  %p339_p3 = por %p338_p2, %p337_p1 }
   0xa   :  { %314 = vmatprep.subr.bf16.mxu1 %v313_v13 }
   0xb   :  { %p340_p4 = pnand %p339_p3, %p333_p0 }
   0xc   :  { %280 = vmatmul.mubr.msk.f32.vlgmr.msra.gmra.mrb[0].mxu0 %vm34_vm0, %v22_v7 }
   0xd   :  { %316 = vmatpush3.bf16.msra.mxu1 %v313_v13 }
   0xe   :  { %318 = vmatprep.subr.bf16.mxu1 %v317_v16 }
  0x11   :  { %320 = vmatpush3.bf16.msra.mxu1 %v317_v16 }
  0x12   :  { %322 = vmatprep.subr.bf16.mxu1 %v321_v19 }
  0x15   :  { %324 = vmatpush3.bf16.msra.mxu1 %v321_v19 }
  0xdf   :  { %v281_v21 = vpop.f32.mrb[0].mxu0 }
  0xe0   :  { %v113_v22 = vadd.f32 %v281_v21, %v249_v20  ;;  %v107_v23 = vpop.f32.mrb[1].mxu0 }
  0xe1   :  { %v108_v24 = vadd.f32 %v249_v20, %v107_v23 }
  0xe2   :  { %v119_v25 = vmul.f32 %v113_v22, %v113_v22  ;;  %v117_v29 = vmul.f32 1.7728106, %v113_v22  ;;  %v127_v40 = vmul.f32 0.5, %v113_v22 }
  0xe3   :  { %v118_v26 = vmul.f32 %v108_v24, %v108_v24  ;;  %v116_v31 = vmul.f32 1.7728106, %v108_v24  ;;  %v126_v38 = vmul.f32 0.5, %v108_v24 }
  0xe4   :  { %v121_v27 = vmul.f32 0.044715, %v119_v25 }
  0xe5   :  { %v120_v28 = vmul.f32 0.044715, %v118_v26 }
  0xe6   :  { %v123_v30 = vadd.f32 1.0, %v121_v27 }
  0xe7   :  { %v122_v32 = vadd.f32 1.0, %v120_v28 }
  0xe8   :  { %v125_v33 = vmul.f32 %v123_v30, %v117_v29 }
  0xe9   :  { %v124_v34 = vmul.f32 %v122_v32, %v116_v31 }
  0xea   :  { %328 = vtanh.f32 %v125_v33 }
  0xeb   :  { %330 = vtanh.f32 %v124_v34 }
  0xf4   :  { %v329_v35 = vpop.eup %328 }
  0xf5   :  { %v331_v36 = vpop.eup %330  ;;  %v131_v37 = vadd.f32 1.0, %v329_v35 }
  0xf6   :  { %v130_v39 = vadd.f32 1.0, %v331_v36 }
  0xf7   :  { %v133_v42 = vmul.f32 %v131_v37, %v127_v40 }
  0xf8   :  { %v132_v41 = vmul.f32 %v130_v39, %v126_v38 }
  0xfa   :  { %298 = vmatprep.mubr.msk.f32.mxu1 %vm149_vm1, %v132_v41 }
  0xfb   :  { %299 = vmatmul.mubr.msk.f32.vlgmr.msra.gmra.mrb[0].mxu1 %vm149_vm1, %v133_v42 }
 0x1ce   :  { %v300_v44 = vpop.f32.mrb[0].mxu1 }
 0x1cf   :  { %v228_v45 = vadd.f32 %v300_v44, %v252_v43  ;;  %v222_v46 = vpop.f32.mrb[1].mxu1 }
 0x1d0   :  { %v223_v47 = vadd.f32 %v252_v43, %v222_v46 }
 0x1d1   :  { %232 = vst.msk [vmem:[#allocation2 + $0x8] sm:$0xff] %vm34_vm0, %v228_v45 }
 0x1d2   :  { %231 = vst.msk [vmem:[#allocation2] sm:$0xff] %vm34_vm0, %v223_v47 }
 0x1d3   :  { %343 = shalt.err (!%p340_p4)
}
 0x1d4   :  { %s344_s25 = scalar_lea.hbm %s458_s5, 256 }
 0x1d5   :  { %p345_p5 = scmp.ne.s32.totalorder %s458_s5, %s344_s25  ;;  %p348_p6 = scmp.lt.u32.totalorder %s344_s25, %s458_s5 }
 0x1d7   :  { %p350_p7 = pnand %p348_p6, %p345_p5 }
 0x1d9   :  { %353 = shalt.err (!%p350_p7)
}
 0x1da   :  { %s357_s30 = smov 128   ;;  %s358_s1 = smov 8  }
 0x1db   :  { %244 = dma.vmem_to_hbm [thread:$0]  %s239_s22, 256, %s458_s5, [#allocation3], %s357_s30, %s357_s30, %s358_s1  }
 0x1dc   :  { %354 = dma.done.wait [#allocation3], 256  }
 0x1dd   :  { %355 = vsyncadd [#allocation3], 4294967040 }
 0x1de   :  { %248 = vsyncpa [#allocation3], 1 }

</bundles_post_ra>
